<compile_context>
chip_gen: v6e
topology: v6e:2x2x1
jax: 0.10.0
libtpu: 0.0.40
codegen_flags: <defaults>
</compile_context>

<pallas_src>
import functools

import jax
import jax.numpy as jnp
from jax.experimental import pallas as pl
from jax.experimental.pallas import tpu as pltpu

EPS = 1e-6      # module-level EPS in the PyTorch code
BN_EPS = 1e-5   # nn.BatchNorm1d default eps
_VMEM_LIMIT = 48 * 1024 * 1024   # > default scoped limit, < v7x physical 64 MiB


def _fast_reciprocal(x):
    # EUP approximate reciprocal + one Newton-Raphson step: keeps the exact
    # fp32 divide sequence off the VALU while staying at ~1e-6 relative error.
    r = pl.reciprocal(x, approx=True)
    return r * (2.0 - x * r)


def _pick_tile_n(n):
    # Largest lane-aligned tile that divides N (keeps the (8,128) block rule).
    for cand in (2048, 1024, 512, 256, 128):
        if n % cand == 0:
            return cand
    return n  # unaligned / tiny N: single tile per component (demo uses N=128)


def _x_spec(cin, tn, nt_per_comp, v):
    # Component v, tile nt of x viewed as (B, Cin, 3*N): block (1, Cin, Tn).
    def imap(b, nt):
        return (b, 0, v * nt_per_comp + nt)
    return pl.BlockSpec((1, cin, tn), imap)


def _const_spec(shape):
    # Small operand resident across the whole grid (DMA'd once).
    return pl.BlockSpec(shape, lambda b, nt: (0, 0))


# --------------------------- pass 1: BN statistics ---------------------------
def _vn_stats_kernel(x0_ref, x1_ref, x2_ref, wf_ref, sum_ref, sumsq_ref):
    @pl.when((pl.program_id(0) == 0) & (pl.program_id(1) == 0))
    def _init():
        sum_ref[...] = jnp.zeros_like(sum_ref)
        sumsq_ref[...] = jnp.zeros_like(sumsq_ref)

    wf = wf_ref[...]                                             # (Cout, Cin)
    p0 = jnp.dot(wf, x0_ref[0], preferred_element_type=jnp.float32)  # (Cout, Tn)
    p1 = jnp.dot(wf, x1_ref[0], preferred_element_type=jnp.float32)
    p2 = jnp.dot(wf, x2_ref[0], preferred_element_type=jnp.float32)

    norm = jnp.sqrt(p0 * p0 + p1 * p1 + p2 * p2) + EPS           # (Cout, Tn)
    sum_ref[...] += jnp.sum(norm, axis=1, keepdims=True)
    sumsq_ref[...] += jnp.sum(norm * norm, axis=1, keepdims=True)


# --------------------------- pass 2: BN + VN leaky-ReLU -----------------------
def _vn_apply_kernel(x0_ref, x1_ref, x2_ref, w_ref, scale_ref, shift_ref,
                     out_ref, *, cout, n, tn, negative_slope):
    w = w_ref[...]                      # (2*Cout, Cin) = [feat ; dir]
    scale = scale_ref[...]              # (Cout, 1)
    shift = shift_ref[...]              # (Cout, 1)

    # One matmul per vector component, feat+dir fused via concatenated weights.
    y0 = jnp.dot(w, x0_ref[0], preferred_element_type=jnp.float32)   # (2Cout, Tn)
    y1 = jnp.dot(w, x1_ref[0], preferred_element_type=jnp.float32)
    y2 = jnp.dot(w, x2_ref[0], preferred_element_type=jnp.float32)
    p = [y0[:cout], y1[:cout], y2[:cout]]
    d = [y0[cout:], y1[cout:], y2[cout:]]

    # VNBatchNorm: norm_bn = norm * scale + shift (scale/shift folded outside).
    norm = jnp.sqrt(p[0] * p[0] + p[1] * p[1] + p[2] * p[2]) + EPS   # (Cout, Tn)
    ratio = (norm * scale + shift) * _fast_reciprocal(norm)
    p = [pv * ratio for pv in p]

    # VN leaky ReLU, simplified: out = p - (1-ns)*where(dot<0, dot/(|d|^2+eps), 0)*d
    dotprod = p[0] * d[0] + p[1] * d[1] + p[2] * d[2]
    d_norm_sq = d[0] * d[0] + d[1] * d[1] + d[2] * d[2]
    inv_dns = _fast_reciprocal(d_norm_sq + EPS)
    coef = (1.0 - negative_slope) * jnp.where(dotprod < 0, dotprod * inv_dns, 0.0)

    # Output block spans the full merged (Cout, 3N) lane axis for batch b and is
    # written back to HBM once per b; each grid step writes its 3 lane windows.
    base = pl.program_id(1) * tn
    for v in range(3):
        off = pl.multiple_of(v * n + base, tn)
        out_ref[0, :, pl.ds(off, tn)] = (p[v] - coef * d[v]).astype(out_ref.dtype)


# --------------------------------- wrapper -----------------------------------
def vn_linear_leakyrelu(x, w_feat, w_dir, gamma, beta, negative_slope=0.2):
    """x: (B, C_in, 3, N) PyTorch layout; returns (B, C_out, 3, N)."""
    B, Cin, V, N = x.shape
    assert V == 3
    Cout = w_feat.shape[0]
    Tn = _pick_tile_n(N)
    NT = N // Tn
    M = B * N

    # Free trailing-dim merges: no transposes, no extra HBM traffic.
    x2 = x.reshape(B, Cin, 3 * N)
    w_cat = jnp.concatenate([w_feat, w_dir], axis=0)   # (2*Cout, Cin)

    x_specs = [_x_spec(Cin, Tn, NT, v) for v in range(3)]

    # ---- pass 1: accumulate per-channel sum / sum-of-squares of ||p|| ----
    stats_cost = pl.CostEstimate(
        flops=2 * 3 * M * Cin * Cout + 10 * M * Cout,
        transcendentals=M * Cout,
        bytes_accessed=4 * (3 * M * Cin + Cout * Cin + 2 * Cout))
    s, ss = pl.pallas_call(
        _vn_stats_kernel,
        grid=(B, NT),
        in_specs=x_specs + [_const_spec((Cout, Cin))],
        out_specs=(pl.BlockSpec((Cout, 1), lambda b, nt: (0, 0)),
                   pl.BlockSpec((Cout, 1), lambda b, nt: (0, 0))),
        out_shape=(jax.ShapeDtypeStruct((Cout, 1), jnp.float32),
                   jax.ShapeDtypeStruct((Cout, 1), jnp.float32)),
        compiler_params=pltpu.CompilerParams(
            dimension_semantics=("arbitrary", "arbitrary"),
            vmem_limit_bytes=_VMEM_LIMIT),
        cost_estimate=stats_cost,
    )(x2, x2, x2, w_feat)

    # Tiny finalize in plain JAX: fold mean/var/gamma/beta into scale & shift.
    mean = s / M
    var = ss / M - mean * mean               # biased variance (BatchNorm training)
    scale = gamma.reshape(Cout, 1) * jax.lax.rsqrt(var + BN_EPS)
    shift = beta.reshape(Cout, 1) - mean * scale

    # ---- pass 2: re-run matmuls, apply BN + VN leaky-ReLU, write output ----
    apply_cost = pl.CostEstimate(
        flops=2 * 3 * M * Cin * (2 * Cout) + 30 * M * Cout,
        transcendentals=3 * M * Cout,
        bytes_accessed=4 * (3 * M * Cin + 3 * M * Cout + 2 * Cout * Cin + 4 * Cout))
    out2 = pl.pallas_call(
        functools.partial(_vn_apply_kernel, cout=Cout, n=N, tn=Tn,
                          negative_slope=negative_slope),
        grid=(B, NT),
        in_specs=x_specs + [_const_spec((2 * Cout, Cin)),
                            _const_spec((Cout, 1)),
                            _const_spec((Cout, 1))],
        out_specs=pl.BlockSpec((1, Cout, 3 * N), lambda b, nt: (b, 0, 0)),
        out_shape=jax.ShapeDtypeStruct((B, Cout, 3 * N), jnp.float32),
        compiler_params=pltpu.CompilerParams(
            dimension_semantics=("parallel", "arbitrary"),
            vmem_limit_bytes=_VMEM_LIMIT),
        cost_estimate=apply_cost,
    )(x2, x2, x2, w_cat, scale, shift)

    # Free trailing-dim split back to PyTorch layout.
    return out2.reshape(B, Cout, 3, N)


# -------------------------------- reference ----------------------------------
def reference(x, w_feat, w_dir, gamma, beta, negative_slope=0.2):
    """Pure-JAX reference written directly against the PyTorch layout."""
    p = jnp.einsum('oc,bcvn->bovn', w_feat, x)
    d = jnp.einsum('oc,bcvn->bovn', w_dir, x)
    norm = jnp.sqrt(jnp.sum(p * p, axis=2)) + EPS                  # (B, Co, N)
    mean = jnp.mean(norm, axis=(0, 2), keepdims=True)
    var = jnp.mean((norm - mean) ** 2, axis=(0, 2), keepdims=True)
    norm_bn = ((norm - mean) / jnp.sqrt(var + BN_EPS)
               * gamma[None, :, None] + beta[None, :, None])
    p = p / norm[:, :, None, :] * norm_bn[:, :, None, :]
    dotprod = jnp.sum(p * d, axis=2, keepdims=True)
    mask = (dotprod >= 0).astype(x.dtype)
    dns = jnp.sum(d * d, axis=2, keepdims=True)
    ns = negative_slope
    return ns * p + (1 - ns) * (mask * p + (1 - mask) * (p - dotprod / (dns + EPS) * d))


if __name__ == "__main__":
    # Small shapes consistent with dim=4 input [B, C, 3, N]; N=128 keeps the
    # lane tile 128-aligned.
    B, Cin, Cout, N = 2, 4, 8, 128
    key = jax.random.PRNGKey(0)
    k1, k2, k3 = jax.random.split(key, 3)

    x = jax.random.normal(k1, (B, Cin, 3, N), jnp.float32)
    # nn.Linear(in, out, bias=False).weight has shape (out, in).
    w_feat = 0.5 * jax.random.normal(k2, (Cout, Cin), jnp.float32)
    w_dir = 0.5 * jax.random.normal(k3, (Cout, Cin), jnp.float32)
    gamma = jnp.ones((Cout,), jnp.float32)    # BatchNorm1d weight init
    beta = jnp.zeros((Cout,), jnp.float32)    # BatchNorm1d bias init

    out = jax.block_until_ready(vn_linear_leakyrelu(x, w_feat, w_dir, gamma, beta))
    ref = reference(x, w_feat, w_dir, gamma, beta)

    assert out.shape == (B, Cout, 3, N), out.shape
    # Tolerance 1e-3: sum/sum-of-squares batch stats + EUP approx-recip w/ one
    # Newton step differ from the two-pass fp32 reference at the ~1e-4 level.
    assert jnp.allclose(out, ref, atol=1e-3, rtol=1e-3), \
        float(jnp.max(jnp.abs(out - ref)))
    print("KERNEL_OK")
</pallas_src>

<mosaic_0001>
module attributes {stable_mosaic.version = 11 : i64} {
  func.func @_vn_stats_kernel(%arg0: i32, %arg1: i32, %arg2: memref<1x4x128xf32, #tpu.memory_space<vmem>>, %arg3: memref<1x4x128xf32, #tpu.memory_space<vmem>>, %arg4: memref<1x4x128xf32, #tpu.memory_space<vmem>>, %arg5: memref<8x4xf32, #tpu.memory_space<vmem>>, %arg6: memref<8x1xf32, #tpu.memory_space<vmem>>, %arg7: memref<8x1xf32, #tpu.memory_space<vmem>>) attributes {dimension_semantics = [#tpu.dimension_semantics<arbitrary>, #tpu.dimension_semantics<arbitrary>], iteration_bounds = array<i64: 2, 1>, scalar_prefetch = 0 : i64, scratch_operands = 0 : i64, tpu.core_type = #tpu.core_type<tc>, window_params = [{transform_indices = @transform_0, window_bounds = array<i64: 1, 4, 128>}, {transform_indices = @transform_1, window_bounds = array<i64: 1, 4, 128>}, {transform_indices = @transform_2, window_bounds = array<i64: 1, 4, 128>}, {pipeline_mode = #tpu.pipeline_mode<synchronous>, transform_indices = @transform_3, window_bounds = array<i64: 8, 4>}, {pipeline_mode = #tpu.pipeline_mode<synchronous>, transform_indices = @transform_4, window_bounds = array<i64: 8, 1>}, {pipeline_mode = #tpu.pipeline_mode<synchronous>, transform_indices = @transform_5, window_bounds = array<i64: 8, 1>}]} {
    %c0_i32 = arith.constant 0 : i32
    %0 = arith.cmpi eq, %arg0, %c0_i32 : i32
    %c0_i32_0 = arith.constant 0 : i32
    %1 = arith.cmpi eq, %arg1, %c0_i32_0 : i32
    %2 = arith.andi %0, %1 : i1
    %3 = arith.extui %2 : i1 to i32
    %c0_i32_1 = arith.constant 0 : i32
    %4 = arith.cmpi ne, %3, %c0_i32_1 : i32
    scf.if %4 {
      %cst_25 = arith.constant 0.000000e+00 : f32
      %34 = vector.broadcast %cst_25 : f32 to vector<8x1xf32>
      %c0_26 = arith.constant 0 : index
      %c0_27 = arith.constant 0 : index
      %35 = vector.load %arg6[%c0_26, %c0_27] : memref<8x1xf32, #tpu.memory_space<vmem>>, vector<8x1xf32>
      tpu.vector_store %arg6[%c0_26, %c0_27], %34 {strides = array<i32>} : memref<8x1xf32, #tpu.memory_space<vmem>>, vector<8x1xf32>,
      %cst_28 = arith.constant 0.000000e+00 : f32
      %36 = vector.broadcast %cst_28 : f32 to vector<8x1xf32>
      %c0_29 = arith.constant 0 : index
      %c0_30 = arith.constant 0 : index
      %37 = vector.load %arg7[%c0_29, %c0_30] : memref<8x1xf32, #tpu.memory_space<vmem>>, vector<8x1xf32>
      tpu.vector_store %arg7[%c0_29, %c0_30], %36 {strides = array<i32>} : memref<8x1xf32, #tpu.memory_space<vmem>>, vector<8x1xf32>,
    } else {
    }
    %c0 = arith.constant 0 : index
    %c0_2 = arith.constant 0 : index
    %5 = vector.load %arg5[%c0, %c0_2] : memref<8x4xf32, #tpu.memory_space<vmem>>, vector<8x4xf32>
    %c0_3 = arith.constant 0 : index
    %c0_4 = arith.constant 0 : index
    %c0_5 = arith.constant 0 : index
    %6 = vector.load %arg2[%c0_3, %c0_4, %c0_5] : memref<1x4x128xf32, #tpu.memory_space<vmem>>, vector<1x4x128xf32>
    %7 = vector.shape_cast %6 : vector<1x4x128xf32> to vector<4x128xf32>
    %cst = arith.constant dense<0.000000e+00> : vector<8x128xf32>
    %8 = tpu.matmul %5, %7, %cst {dimension_numbers = #tpu.dot_dimension_numbers<[1], [0], [0], [1], [0, 0, 1, 1], [], []>} : vector<8x4xf32>, vector<4x128xf32>, vector<8x128xf32> -> vector<8x128xf32>
    %c0_6 = arith.constant 0 : index
    %c0_7 = arith.constant 0 : index
    %c0_8 = arith.constant 0 : index
    %9 = vector.load %arg3[%c0_6, %c0_7, %c0_8] : memref<1x4x128xf32, #tpu.memory_space<vmem>>, vector<1x4x128xf32>
    %10 = vector.shape_cast %9 : vector<1x4x128xf32> to vector<4x128xf32>
    %cst_9 = arith.constant dense<0.000000e+00> : vector<8x128xf32>
    %11 = tpu.matmul %5, %10, %cst_9 {dimension_numbers = #tpu.dot_dimension_numbers<[1], [0], [0], [1], [0, 0, 1, 1], [], []>} : vector<8x4xf32>, vector<4x128xf32>, vector<8x128xf32> -> vector<8x128xf32>
    %c0_10 = arith.constant 0 : index
    %c0_11 = arith.constant 0 : index
    %c0_12 = arith.constant 0 : index
    %12 = vector.load %arg4[%c0_10, %c0_11, %c0_12] : memref<1x4x128xf32, #tpu.memory_space<vmem>>, vector<1x4x128xf32>
    %13 = vector.shape_cast %12 : vector<1x4x128xf32> to vector<4x128xf32>
    %cst_13 = arith.constant dense<0.000000e+00> : vector<8x128xf32>
    %14 = tpu.matmul %5, %13, %cst_13 {dimension_numbers = #tpu.dot_dimension_numbers<[1], [0], [0], [1], [0, 0, 1, 1], [], []>} : vector<8x4xf32>, vector<4x128xf32>, vector<8x128xf32> -> vector<8x128xf32>
    %15 = arith.mulf %8, %8 : vector<8x128xf32>
    %16 = arith.mulf %11, %11 : vector<8x128xf32>
    %17 = arith.addf %15, %16 : vector<8x128xf32>
    %18 = arith.mulf %14, %14 : vector<8x128xf32>
    %19 = arith.addf %17, %18 : vector<8x128xf32>
    %20 = math.sqrt %19 : vector<8x128xf32>
    %cst_14 = arith.constant 9.99999997E-7 : f32
    %21 = vector.broadcast %cst_14 : f32 to vector<8x128xf32>
    %22 = arith.addf %20, %21 : vector<8x128xf32>
    %c0_15 = arith.constant 0 : index
    %c0_16 = arith.constant 0 : index
    %23 = vector.load %arg6[%c0_15, %c0_16] : memref<8x1xf32, #tpu.memory_space<vmem>>, vector<8x1xf32>
    %cst_17 = arith.constant dense<0.000000e+00> : vector<8xf32>
    %24 = vector.multi_reduction <add>, %22, %cst_17 [1] : vector<8x128xf32> to vector<8xf32>
    %25 = vector.shape_cast %24 : vector<8xf32> to vector<8x1xf32>
    %26 = arith.addf %23, %25 : vector<8x1xf32>
    %c0_18 = arith.constant 0 : index
    %c0_19 = arith.constant 0 : index
    %27 = vector.load %arg6[%c0_18, %c0_19] : memref<8x1xf32, #tpu.memory_space<vmem>>, vector<8x1xf32>
    tpu.vector_store %arg6[%c0_18, %c0_19], %26 {strides = array<i32>} : memref<8x1xf32, #tpu.memory_space<vmem>>, vector<8x1xf32>,
    %c0_20 = arith.constant 0 : index
    %c0_21 = arith.constant 0 : index
    %28 = vector.load %arg7[%c0_20, %c0_21] : memref<8x1xf32, #tpu.memory_space<vmem>>, vector<8x1xf32>
    %29 = arith.mulf %22, %22 : vector<8x128xf32>
    %cst_22 = arith.constant dense<0.000000e+00> : vector<8xf32>
    %30 = vector.multi_reduction <add>, %29, %cst_22 [1] : vector<8x128xf32> to vector<8xf32>
    %31 = vector.shape_cast %30 : vector<8xf32> to vector<8x1xf32>
    %32 = arith.addf %28, %31 : vector<8x1xf32>
    %c0_23 = arith.constant 0 : index
    %c0_24 = arith.constant 0 : index
    %33 = vector.load %arg7[%c0_23, %c0_24] : memref<8x1xf32, #tpu.memory_space<vmem>>, vector<8x1xf32>
    tpu.vector_store %arg7[%c0_23, %c0_24], %32 {strides = array<i32>} : memref<8x1xf32, #tpu.memory_space<vmem>>, vector<8x1xf32>,
    return
  }
  func.func @transform_0(%arg0: i32, %arg1: i32) -> (i32, i32, i32) {
    %c0_i32 = arith.constant 0 : i32
    %0 = arith.addi %c0_i32, %arg1 : i32
    %c0_i32_0 = arith.constant 0 : i32
    %c0_i32_1 = arith.constant 0 : i32
    return %arg0, %c0_i32_0, %0 : i32, i32, i32
  }
  func.func @transform_1(%arg0: i32, %arg1: i32) -> (i32, i32, i32) {
    %c1_i32 = arith.constant 1 : i32
    %0 = arith.addi %c1_i32, %arg1 : i32
    %c0_i32 = arith.constant 0 : i32
    %c0_i32_0 = arith.constant 0 : i32
    return %arg0, %c0_i32, %0 : i32, i32, i32
  }
  func.func @transform_2(%arg0: i32, %arg1: i32) -> (i32, i32, i32) {
    %c2_i32 = arith.constant 2 : i32
    %0 = arith.addi %c2_i32, %arg1 : i32
    %c0_i32 = arith.constant 0 : i32
    %c0_i32_0 = arith.constant 0 : i32
    return %arg0, %c0_i32, %0 : i32, i32, i32
  }
  func.func @transform_3(%arg0: i32, %arg1: i32) -> (i32, i32) {
    %c0_i32 = arith.constant 0 : i32
    %c0_i32_0 = arith.constant 0 : i32
    %c0_i32_1 = arith.constant 0 : i32
    return %c0_i32, %c0_i32_0 : i32, i32
  }
  func.func @transform_4(%arg0: i32, %arg1: i32) -> (i32, i32) {
    %c0_i32 = arith.constant 0 : i32
    %c0_i32_0 = arith.constant 0 : i32
    %c0_i32_1 = arith.constant 0 : i32
    return %c0_i32, %c0_i32_0 : i32, i32
  }
  func.func @transform_5(%arg0: i32, %arg1: i32) -> (i32, i32) {
    %c0_i32 = arith.constant 0 : i32
    %c0_i32_0 = arith.constant 0 : i32
    %c0_i32_1 = arith.constant 0 : i32
    return %c0_i32, %c0_i32_0 : i32, i32
  }
}

</mosaic_0001>

<bundles_post_ra>
// kernel: tpu_custom_call.1
= control target key start
LH: loop header
LB: loop body
LE: loop exit
PB: predicated region body
PF: predicated region fallthrough
CT: control target
= control target key end

     0   :  { %s1155_s0 = inlined_call_operand.hbm [shape: f32[2,4,384], index: 0, kind: input, shape index: {}]   ;;  %s1156_s1 = inlined_call_operand.hbm [shape: f32[2,4,384], index: 1, kind: input, shape index: {}]   ;;  %s1157_s2 = inlined_call_operand.hbm [shape: f32[2,4,384], index: 2, kind: input, shape index: {}]   ;;  %s1158_s3 = inlined_call_operand.vmem [shape: f32[8,4], index: 3, kind: input, shape index: {}]   ;;  %s1159_s4 = inlined_call_operand.vmem [shape: f32[8,1], index: 4, kind: output, shape index: {0}]   ;;  %s1160_s5 = inlined_call_operand.vmem [shape: f32[8,1], index: 5, kind: output, shape index: {1}]  }
   0x1   :  { %1162 = sst [smem:[#allocation9_spill]] %s1156_s1 }
   0x2   :  { %11 = vsyncpa [#allocation3], 0 }
   0x3   :  { %13 = vsyncpa [#allocation3 + $0x1], 0 }
   0x4   :  { %14 = vsyncpa [#allocation5], 0 }
   0x5   :  { %16 = vsyncpa [#allocation5 + $0x1], 0  ;;  %s988_s18 = smov 0   ;;  %s990_s19 = smov 0  }
   0x6   :  { %s992_s20 = smov 0   ;;  %s994_s21 = smov 0  }
   0x7   :  { %s996_s22 = smov 0   ;;  %s998_s23 = smov 0  }
   0x8 LB: > { %s1161_s24 = sadd.s32 4294967295, %s950_s23   ;;  %s34_s25 = sadd.s32 1, %s946_s22  ;;  %s950_s23 = sphi %s998_s23, %s22_s23   ;;  %s946_s22 = sphi %s996_s22, %s1172_s22   ;;  %s942_s21 = sphi %s994_s21, %s1171_s21   ;;  %s938_s20 = sphi %s992_s20, %s1170_s20   ;;  %s934_s19 = sphi %s990_s19, %s1169_s19   ;;  %s930_s18 = sphi %s988_s18, %s1168_s18  }
   0x9   : > { %p36_p0 = scmp.ge.s32.totalorder %s34_s25, 2  ;;  %s43_s26 = sadd.s32 1, %s938_s20 }
   0xa   : > { %p50_p1 = scmp.ne.s32.totalorder %s938_s20, %s934_s19  ;;  %p51_p2 = scmp.eq.s32.totalorder %s950_s23, 0 }
   0xb   : > { %s1174_s25 = smov (%p36_p0, %s34_s25), 0  ;;  %p56_p4 = scmp.ne.s32.totalorder %s934_s19, %s930_s18 }
   0xc   : > { %p52_p3 = por %p51_p2, %p50_p1  ;;  %s38_s27 = ssub.s32 %s946_s22, %s1174_s25 }
   0xd   : > { %p57_p5 = scmp.eq.s32.totalorder %s1161_s24, 0  ;;  %p41_p6 = scmp.eq.s32.totalorder %s38_s27, 0 }
   0xe   : > { %p756_p8 = scmp.lt.s32.totalorder %s950_s23, 2  ;;  %s206_s30 = sand.u32 1, %s938_s20  }
   0xf   : > { %p1029_p7 = por %p57_p5, %p56_p4  ;;  %s1039_s6 = smul.u32 192, %s946_s22 }
  0x10   : > { %s1035_s29 = scalar_select %p41_p6, %s938_s20, %s43_s26  }
  0x11   : > { %s1043_s7 = sshll.u32 %s206_s30, 2  ;;  %p1045_p9 = pnand %p756_p8, %p52_p3 }
  0x12   : > { %s226_s9 = sand.u32 1, %s950_s23   ;;  %s1165_s1 = sld [smem:[#allocation9_spill]] }
  0x13   : > { %s230_s13 = scalar_lea.vmem [#allocation4], %s1043_s7  ;;  %s1055_s16 = scalar_lea.sflag [#allocation5], %s226_s9 }
  0x14   : > { %s240_s14 = sshll.u32 %s230_s13, 4  ;;  %p812_p10 = pneg %p1045_p9  ;;  %s241_s14 = int_to_ptr.vmem [resolvable:$true] %s240_s14 }
  0x15   : > { %s823_s17 = scalar_lea.vmem %s241_s14, 64  ;;  %s952_s18 = smov [#allocation4]  }
  0x16   : > { %p824_p11 = scmp.ne.s32.totalorder %s241_s14, %s823_s17  ;;  %s828_s26 = sshll.u32 %s952_s18, 4  ;;  %s829_s26 = int_to_ptr.vmem [resolvable:$false] %s828_s26 }
  0x17   : > { %s830_s27 = scalar_lea.vmem %s829_s26, 128  ;;  %p831_p0 = scmp.lt.s32.totalorder %s241_s14, %s829_s26 }
  0x18   : > { %s626_s12 = scalar_lea.hbm %s1165_s1, %s1039_s6  ;;  %p826_p12 = pnand %p824_p11, %p812_p10 }
  0x19   : > { %s627_s15 = scalar_lea.hbm %s626_s12, 64  ;;  %p832_p1 = scmp.lt.s32.totalorder %s830_s27, %s823_s17 }
  0x1a   : > { %p827_p13 = pneg %p826_p12 }
  0x1b   : > { %p833_p2 = por %p832_p1, %p831_p0 }
  0x1d   : > { %p834_p3 = pnand %p833_p2, %p827_p13 }
  0x1f   : > { %837 = shalt.err (!%p834_p3)
}
  0x20   : > { %752 = dma.hbm_to_vmem [thread:$0]  (!%p1045_p9), %s627_s15, 64, %s241_s14, %s1055_s16  }
  0x21   : > { %p704_p4 = scmp.ge.s32.totalorder %s950_s23, 1  ;;  %p266_p5 = scmp.lt.s32.totalorder %s950_s23, 3 }
  0x22   : > { %s217_s12 = scalar_lea.hbm %s1155_s0, %s1039_s6  ;;  %s210_s13 = scalar_lea.vmem [#allocation2], %s1043_s7 }
  0x23   : > { %p1067_p6 = pnand %p704_p4, %p266_p5  ;;  %s219_s17 = sshll.u32 %s210_s13, 4  ;;  %s220_s17 = int_to_ptr.vmem [resolvable:$true] %s219_s17 }
  0x24   : > { %s634_s27 = scalar_lea.hbm %s1157_s2, %s1039_s6  ;;  %s207_s24 = scalar_lea.sflag [#allocation3], %s206_s30 }
  0x25   : > { %s852_s14 = scalar_lea.vmem %s220_s17, 64  ;;  %s953_s15 = smov [#allocation2]  }
  0x26   : > { %p853_p8 = scmp.ne.s32.totalorder %s220_s17, %s852_s14  ;;  %s857_s1 = sshll.u32 %s953_s15, 4  ;;  %s858_s1 = int_to_ptr.vmem [resolvable:$false] %s857_s1 }
  0x27   : > { %s859_s10 = scalar_lea.vmem %s858_s1, 128  ;;  %p860_p13 = scmp.lt.s32.totalorder %s220_s17, %s858_s1 }
  0x28   : > { %p855_p11 = pnand %p853_p8, %p812_p10  ;;  %p861_p0 = scmp.lt.s32.totalorder %s859_s10, %s852_s14 }
  0x2a   : > { %p856_p12 = pneg %p855_p11  ;;  %p862_p1 = por %p861_p0, %p860_p13 }
  0x2c   : > { %p863_p2 = pnand %p862_p1, %p856_p12 }
  0x2e   : > { %866 = shalt.err (!%p863_p2)
}
  0x2f   : > { %749 = dma.hbm_to_vmem [thread:$0]  (!%p1045_p9), %s217_s12, 64, %s220_s17, %s207_s24  }
  0x30   : > { %s635_s30 = scalar_lea.hbm %s634_s27, 128  ;;  %s251_s6 = scalar_lea.vmem [#allocation6], %s1043_s7 }
  0x31   : > { %s261_s11 = sshll.u32 %s251_s6, 4  ;;  %s954_s1 = smov [#allocation6]   ;;  %s262_s11 = int_to_ptr.vmem [resolvable:$true] %s261_s11 }
  0x32   : > { %s880_s13 = scalar_lea.vmem %s262_s11, 64  ;;  %s885_s18 = sshll.u32 %s954_s1, 4  ;;  %s886_s18 = int_to_ptr.vmem [resolvable:$false] %s885_s18 }
  0x33   : > { %p881_p3 = scmp.ne.s32.totalorder %s262_s11, %s880_s13  ;;  %s887_s26 = scalar_lea.vmem %s886_s18, 128 }
  0x34   : > { %p888_p8 = scmp.lt.s32.totalorder %s262_s11, %s886_s18  ;;  %p889_p11 = scmp.lt.s32.totalorder %s887_s26, %s880_s13 }
  0x35   : > { %p883_p4 = pnand %p881_p3, %p812_p10 }
  0x36   : > { %p890_p12 = por %p889_p11, %p888_p8 }
  0x37   : > { %p884_p5 = pneg %p883_p4 }
  0x39   : > { %p891_p13 = pnand %p890_p12, %p884_p5 }
  0x3b   : > { %894 = shalt.err (!%p891_p13)
}
  0x3c   : > { %755 = dma.hbm_to_vmem [thread:$0]  (!%p1045_p9), %s635_s30, 64, %s262_s11, %s1055_s16  }
  0x3d   : > { %270 = sbr.rel (%p1067_p6) target bundleno = 447 (0x1bf), region = 36  ;;  %s272_s24 = sand.u32 (!%p1067_p6), 1, %s934_s19  }
  0x3e   : > { %s1097_s7 = sshll.u32 (!%p1067_p6), %s272_s24, 2  ;;  %s273_s12 = scalar_lea.sflag (!%p1067_p6), [#allocation3], %s272_s24 }
  0x3f   : > { %s276_s17 = scalar_lea.vmem (!%p1067_p6), [#allocation2], %s1097_s7 }
  0x42   : > { %921 = dma.done.wait (%p1029_p7), %s273_s12, 64  }
  0x43   : > { %923 = vsyncadd (%p1029_p7), %s273_s12, 4294967232  ;;  %s1167_s8 = sadd.s32 4294967295, %s950_s23   ;;  %s285_s27 = scalar_lea.vmem [#allocation4], %s1097_s7 }
  0x44   : > { %s281_s16 = sand.u32 1, %s1167_s8  }
  0x45   : > { %s282_s9 = scalar_lea.sflag [#allocation5], %s281_s16 }
  0x46   : > { %925 = dma.done.wait (%p1029_p7), %s282_s9, 128  }
  0x47   : > { %927 = vsyncadd (%p1029_p7), %s282_s9, 4294967168  ;;  %p328_p9 = scmp.eq.s32.totalorder %s942_s21, 0  ;;  %s294_s14 = scalar_lea.vmem [#allocation6], %s1097_s7 }
  0x48   : > { %vm334_vm0 = vcmask (%p328_p9), 7168   ;;  %v955_v0 = vmov (%p328_p9), 0.0  }
  0x49   : > { %333 = sbr.rel (!%p328_p9) target bundleno = 78 (0x4e), region = 52  ;;  %335 = vst.msk [vmem:[%s1159_s4] sm:$0xff] (%p328_p9), %vm334_vm0, %v955_v0  ;;  %336 = vst.msk [vmem:[%s1160_s5] sm:$0xff] (%p328_p9), %vm334_vm0, %v955_v0 }
  0x4e PF: > { %v338_v1 = vld [vmem:[%s276_s17] sm:$0xf]  ;;  %vm343_vm1 = vcmask 1043456   ;;  %v956_v3 = vmov 0.0   ;;  %vm957_vm2 = vmmov 0   ;;  %vm339_vm3 = vcmask 31744  }
  0x4f   : > { %v337_v2 = vld [vmem:[%s1158_s3] sm:$0xff]  ;;  %724 = vmatprep.subr.mxu0 %v956_v3  ;;  %726 = vmatprep.mubr.msk.f32.mxu0 %vm957_vm2, %v956_v3  ;;  %v417_v4 = vld [vmem:[%s285_s27] sm:$0xf]  ;;  %v491_v5 = vld [vmem:[%s294_s14] sm:$0xf]  ;;  %vm582_vm6 = vcmask 7168  }
  0x50   : > { %725 = vmatpush3.msk.msra.mxu0 %vm343_vm1, %v338_v1  ;;  %729 = vmatprep.subr.mxu1 %v956_v3  ;;  %v578_v24 = vld [vmem:[%s1159_s4] sm:$0xff] }
  0x51   : > { %727 = vmatmul.mubr.msk.f32.vlgmr.msra.gmra.mxu0 %vm339_vm3, %v337_v2  ;;  %730 = vmatpush3.msk.msra.mxu1 %vm343_vm1, %v417_v4  ;;  %v584_v27 = vld [vmem:[%s1160_s5] sm:$0xff] }
  0x52   : > { %731 = vmatprep.mubr.msk.f32.mxu1 %vm957_vm2, %v956_v3  ;;  %734 = vmatprep.subr.mxu0 %v956_v3 }
  0x53   : > { %732 = vmatmul.mubr.msk.f32.vlgmr.msra.gmra.mxu1 %vm339_vm3, %v337_v2  ;;  %735 = vmatpush3.msk.msra.mxu0 %vm343_vm1, %v491_v5 }
  0x54   : > { %736 = vmatprep.mubr.msk.f32.mxu0 %vm957_vm2, %v956_v3 }
  0x55   : > { %737 = vmatmul.mubr.msk.f32.vlgmr.msra.gmra.mxu0 %vm339_vm3, %v337_v2 }
 0x111   : > { %v413_v6 = vpop.f32.mrf.mxu0 }
 0x112   : > { %v565_v7 = vmul.f32 %v413_v6, %v413_v6 }
 0x113   : > { %v487_v8 = vpop.f32.mrf.mxu1  ;;  %v728_v9 = vpop.f32.mrf.mxu0 }
 0x114   : > { %v566_v10 = vmul.f32 %v487_v8, %v487_v8 }
 0x115   : > { %v733_v11 = vpop.f32.mrf.mxu1  ;;  %v561_v12 = vpop.f32.mrf.mxu0 }
 0x116   : > { %v567_v13 = vadd.f32 %v566_v10, %v565_v7  ;;  %v568_v14 = vmul.f32 %v561_v12, %v561_v12 }
 0x117   : > { %v738_v15 = vpop.f32.mrf.mxu0 }
 0x118   : > { %v569_v16 = vadd.f32 %v568_v14, %v567_v13 }
 0x11a   : > { %808 = vrsqrt.f32 %v569_v16  ;;  %vm572_vm4 = vcmp.eq.f32.partialorder %v569_v16, inf  ;;  %v575_v19 = vand.u32 2147483648, %v569_v16  ;;  %vm574_vm5 = vcmp.eq.f32.partialorder %v569_v16, 0.0 }
 0x127   : > { %v809_v17 = vpop.eup %808 }
 0x128   : > { %v571_v18 = vmul.f32 %v809_v17, %v569_v16 }
 0x12a   : > { %v573_v20 = vsel %vm572_vm4, %v569_v16, %v571_v18 }
 0x12b   : > { %v576_v21 = vsel %vm574_vm5, %v575_v19, %v573_v20 }
 0x12c   : > { %v577_v22 = vadd.f32 1e-06, %v576_v21 }
 0x12e   : > { %579 = vadd.xlane.f32.xlu0 %v577_v22  ;;  %v585_v23 = vmul.f32 %v577_v22, %v577_v22 }
 0x132   : > { %586 = vadd.xlane.f32.xlu0 %v585_v23 }
 0x1b7   : > { %v580_v25 = vpop.xlane.xlu0 %579 }
 0x1b8   : > { %v581_v26 = vadd.f32 %v580_v25, %v578_v24 }
 0x1ba   : > { %583 = vst.msk [vmem:[%s1159_s4] sm:$0xff] %vm582_vm6, %v581_v26 }
 0x1bb   : > { %v587_v28 = vpop.xlane.xlu0 %586 }
 0x1bc   : > { %v588_v29 = vadd.f32 %v587_v28, %v584_v27 }
 0x1be   : > { %589 = vst.msk [vmem:[%s1160_s5] sm:$0xff] %vm582_vm6, %v588_v29 }
 0x1bf PF: > { %s22_s23 = sadd.s32 1, %s950_s23   ;;  %s1168_s18 = smov %s934_s19 }
 0x1c0   : > { %p19_p7 = scmp.ge.s32.totalorder %s22_s23, 4   ;;  %s1169_s19 = smov %s938_s20 }
 0x1c1   : > { %s1170_s20 = smov %s1035_s29  ;;  %s1171_s21 = smov %s946_s22 }
 0x1c2   : > { %s1172_s22 = smov %s1174_s25  ;;  %21 = sbr.rel (!%p19_p7) target bundleno = 8 (0x8), region = 108 }
 0x1c7   :  { %607 = vsyncpa [#allocation3], 1 }
 0x1c8   :  { %609 = vsyncpa [#allocation3 + $0x1], 1 }
 0x1c9   :  { %610 = vsyncpa [#allocation5], 1 }
 0x1ca   :  { %612 = vsyncpa [#allocation5 + $0x1], 1 }

</bundles_post_ra>
